<compile_context>
chip_gen: v6e
topology: v6e:2x2x1
jax: 0.10.0
libtpu: 0.0.40
codegen_flags: <defaults>
</compile_context>

<pallas_src>
import math

import jax
import jax.numpy as jnp
from jax.experimental import pallas as pl
from jax.experimental.pallas import tpu as pltpu


_LANES = 512            # lane-dense last dim (multiple of 128)
_MAX_TILE_ROWS = 512    # 512x512 f32 tile = 1 MiB
_VMEM_LIMIT = 32 * 1024 * 1024


def _moments_kernel(x_ref, sum_ref, sq_ref):
    """Pass 1: per-lane partial sum / sum-of-squares, accumulated over the grid."""
    @pl.when(pl.program_id(0) == 0)
    def _():
        sum_ref[...] = jnp.zeros_like(sum_ref)
        sq_ref[...] = jnp.zeros_like(sq_ref)

    x = x_ref[...].astype(jnp.float32)
    sum_ref[...] += jnp.sum(x, axis=0, keepdims=True)
    sq_ref[...] += jnp.sum(x * x, axis=0, keepdims=True)


def _flow_kernel(scalars_ref, x_ref, o_ref):
    """Pass 2: elementwise normalize + AEG flow update.

    scalars_ref: SMEM f32[8] = [mean, rstd, vx, 1+vy, wx, 1+wy, afactor, mfactor]
    """
    mean = scalars_ref[0]
    rstd = scalars_ref[1]
    vx = scalars_ref[2]
    vy1 = scalars_ref[3]
    wx = scalars_ref[4]
    wy1 = scalars_ref[5]
    af = scalars_ref[6]
    mf = scalars_ref[7]

    d = (x_ref[...].astype(jnp.float32) - mean) * rstd
    # flow(dx, dy, data) = data * (1 + dy) + dx
    v = d * vy1 + vx
    w = d * wy1 + wx
    # trailing singleton "sum" in the torch module == elementwise product
    dx = af * (v * jax.nn.sigmoid(w))
    dy = mf * jnp.tanh(d)
    o_ref[...] = (d * (1.0 + dy) + dx).astype(o_ref.dtype)


def _pick_tile_rows(rows):
    t = _MAX_TILE_ROWS
    while t > 8 and rows < t:
        t //= 2
    return max(t, 8)


def optaeg_forward(x, params):
    """x: (B, C, H, W) float; params: (6,) f32 = [vx, vy, wx, wy, afactor, mfactor]."""
    shape = x.shape
    total = math.prod(shape)

    rows = pl.cdiv(total, _LANES)
    tile_rows = _pick_tile_rows(rows)
    padded_rows = pl.cdiv(rows, tile_rows) * tile_rows
    padded_total = padded_rows * _LANES
    num_tiles = padded_rows // tile_rows

    xf = x.reshape(-1)
    if padded_total != total:
        xf = jnp.pad(xf, (0, padded_total - total))  # zero pad: no effect on moments
    x2d = xf.reshape(padded_rows, _LANES)

    # ---- pass 1: tiled global reduction (sum, sum of squares) ----------------
    psum, psq = pl.pallas_call(
        _moments_kernel,
        grid=(num_tiles,),
        in_specs=[pl.BlockSpec((tile_rows, _LANES), lambda i: (i, 0))],
        out_specs=[
            pl.BlockSpec((1, _LANES), lambda i: (0, 0)),
            pl.BlockSpec((1, _LANES), lambda i: (0, 0)),
        ],
        out_shape=[
            jax.ShapeDtypeStruct((1, _LANES), jnp.float32),
            jax.ShapeDtypeStruct((1, _LANES), jnp.float32),
        ],
        compiler_params=pltpu.CompilerParams(
            dimension_semantics=("arbitrary",),
            vmem_limit_bytes=_VMEM_LIMIT,
        ),
    )(x2d)

    # Tiny final combine + scalar prep (512-lane reduce + a few scalar ops).
    n = jnp.float32(total)
    s = jnp.sum(psum)
    sq = jnp.sum(psq)
    mean = s / n
    var = (sq - s * s / n) / (n - 1.0)     # unbiased, matches torch .std()
    rstd = jax.lax.rsqrt(var)

    p = params.astype(jnp.float32)
    scalars = jnp.stack([mean, rstd, p[0], 1.0 + p[1], p[2], 1.0 + p[3], p[4], p[5]])

    # ---- pass 2: tiled elementwise flow update -------------------------------
    out2d = pl.pallas_call(
        _flow_kernel,
        grid=(num_tiles,),
        in_specs=[
            pl.BlockSpec(memory_space=pltpu.MemorySpace.SMEM),  # 8 scalar params
            pl.BlockSpec((tile_rows, _LANES), lambda i: (i, 0)),
        ],
        out_specs=pl.BlockSpec((tile_rows, _LANES), lambda i: (i, 0)),
        out_shape=jax.ShapeDtypeStruct((padded_rows, _LANES), x.dtype),
        compiler_params=pltpu.CompilerParams(
            dimension_semantics=("parallel",),
            vmem_limit_bytes=_VMEM_LIMIT,
        ),
    )(scalars, x2d)

    out = out2d.reshape(-1)
    if padded_total != total:
        out = out[:total]
    return out.reshape(shape)


def optaeg_ref(x, params):
    """Pure-JAX reference mirroring the PyTorch forward exactly."""
    vx, vy, wx, wy, af, mf = (params[i] for i in range(6))
    shape = x.shape
    d = x.reshape(shape[0], -1)
    d = d - d.mean()
    d = d / d.std(ddof=1)
    v = d * (1.0 + vy) + vx
    w = d * (1.0 + wy) + wx
    dx = af * (v * jax.nn.sigmoid(w))
    dy = mf * jnp.tanh(d)
    d = d * (1.0 + dy) + dx
    return d.reshape(shape)


if __name__ == "__main__":
    key = jax.random.PRNGKey(0)
    k_x, k_p, k_x2 = jax.random.split(key, 3)

    # Deterministic parameter init: module defaults
    #   vx=0, vy=1, wx=0, wy=1, afactor=0, mfactor=1
    # plus a small deterministic perturbation so every term is exercised.
    defaults = jnp.array([0.0, 1.0, 0.0, 1.0, 0.0, 1.0], dtype=jnp.float32)
    perturb = 0.1 * jax.random.normal(k_p, (6,), dtype=jnp.float32)
    params = defaults + perturb

    # Small NCHW input consistent with a conv feature map (single-tile path).
    B, C, H, W = 2, 4, 16, 16
    x = jax.random.normal(k_x, (B, C, H, W), dtype=jnp.float32)
    out = jax.block_until_ready(optaeg_forward(x, params))
    ref = optaeg_ref(x, params)
    assert out.shape == x.shape and out.dtype == x.dtype
    assert jnp.allclose(out, ref, atol=2e-5, rtol=2e-5), (
        f"max abs err = {jnp.max(jnp.abs(out - ref))}"
    )

    # Second small shape that exercises the multi-tile grid + padding path.
    x2 = jax.random.normal(k_x2, (2, 8, 24, 24), dtype=jnp.float32)
    out2 = jax.block_until_ready(optaeg_forward(x2, params))
    ref2 = optaeg_ref(x2, params)
    assert out2.shape == x2.shape and out2.dtype == x2.dtype
    assert jnp.allclose(out2, ref2, atol=2e-5, rtol=2e-5), (
        f"max abs err = {jnp.max(jnp.abs(out2 - ref2))}"
    )

    print("KERNEL_OK")
</pallas_src>

<mosaic_0001>
module attributes {stable_mosaic.version = 11 : i64} {
  func.func @_moments_kernel(%arg0: i32, %arg1: memref<8x512xf32, #tpu.memory_space<vmem>>, %arg2: memref<1x512xf32, #tpu.memory_space<vmem>>, %arg3: memref<1x512xf32, #tpu.memory_space<vmem>>) attributes {dimension_semantics = [#tpu.dimension_semantics<arbitrary>], iteration_bounds = array<i64: 1>, scalar_prefetch = 0 : i64, scratch_operands = 0 : i64, tpu.core_type = #tpu.core_type<tc>, window_params = [{transform_indices = @transform_0, window_bounds = array<i64: 8, 512>}, {pipeline_mode = #tpu.pipeline_mode<synchronous>, transform_indices = @transform_1, window_bounds = array<i64: 1, 512>}, {pipeline_mode = #tpu.pipeline_mode<synchronous>, transform_indices = @transform_2, window_bounds = array<i64: 1, 512>}]} {
    %c0_i32 = arith.constant 0 : i32
    %0 = arith.cmpi eq, %arg0, %c0_i32 : i32
    %1 = arith.extui %0 : i1 to i32
    %c0_i32_0 = arith.constant 0 : i32
    %2 = arith.cmpi ne, %1, %c0_i32_0 : i32
    scf.if %2 {
      %cst_11 = arith.constant 0.000000e+00 : f32
      %15 = vector.broadcast %cst_11 : f32 to vector<1x512xf32>
      %c0_12 = arith.constant 0 : index
      %c0_13 = arith.constant 0 : index
      %16 = vector.load %arg2[%c0_12, %c0_13] : memref<1x512xf32, #tpu.memory_space<vmem>>, vector<1x512xf32>
      tpu.vector_store %arg2[%c0_12, %c0_13], %15 {strides = array<i32>} : memref<1x512xf32, #tpu.memory_space<vmem>>, vector<1x512xf32>,
      %cst_14 = arith.constant 0.000000e+00 : f32
      %17 = vector.broadcast %cst_14 : f32 to vector<1x512xf32>
      %c0_15 = arith.constant 0 : index
      %c0_16 = arith.constant 0 : index
      %18 = vector.load %arg3[%c0_15, %c0_16] : memref<1x512xf32, #tpu.memory_space<vmem>>, vector<1x512xf32>
      tpu.vector_store %arg3[%c0_15, %c0_16], %17 {strides = array<i32>} : memref<1x512xf32, #tpu.memory_space<vmem>>, vector<1x512xf32>,
    } else {
    }
    %c0 = arith.constant 0 : index
    %c0_1 = arith.constant 0 : index
    %3 = vector.load %arg1[%c0, %c0_1] : memref<8x512xf32, #tpu.memory_space<vmem>>, vector<8x512xf32>
    %c0_2 = arith.constant 0 : index
    %c0_3 = arith.constant 0 : index
    %4 = vector.load %arg2[%c0_2, %c0_3] : memref<1x512xf32, #tpu.memory_space<vmem>>, vector<1x512xf32>
    %cst = arith.constant dense<0.000000e+00> : vector<512xf32>
    %5 = vector.multi_reduction <add>, %3, %cst [0] : vector<8x512xf32> to vector<512xf32>
    %6 = vector.shape_cast %5 : vector<512xf32> to vector<1x512xf32>
    %7 = arith.addf %4, %6 : vector<1x512xf32>
    %c0_4 = arith.constant 0 : index
    %c0_5 = arith.constant 0 : index
    %8 = vector.load %arg2[%c0_4, %c0_5] : memref<1x512xf32, #tpu.memory_space<vmem>>, vector<1x512xf32>
    tpu.vector_store %arg2[%c0_4, %c0_5], %7 {strides = array<i32>} : memref<1x512xf32, #tpu.memory_space<vmem>>, vector<1x512xf32>,
    %c0_6 = arith.constant 0 : index
    %c0_7 = arith.constant 0 : index
    %9 = vector.load %arg3[%c0_6, %c0_7] : memref<1x512xf32, #tpu.memory_space<vmem>>, vector<1x512xf32>
    %10 = arith.mulf %3, %3 : vector<8x512xf32>
    %cst_8 = arith.constant dense<0.000000e+00> : vector<512xf32>
    %11 = vector.multi_reduction <add>, %10, %cst_8 [0] : vector<8x512xf32> to vector<512xf32>
    %12 = vector.shape_cast %11 : vector<512xf32> to vector<1x512xf32>
    %13 = arith.addf %9, %12 : vector<1x512xf32>
    %c0_9 = arith.constant 0 : index
    %c0_10 = arith.constant 0 : index
    %14 = vector.load %arg3[%c0_9, %c0_10] : memref<1x512xf32, #tpu.memory_space<vmem>>, vector<1x512xf32>
    tpu.vector_store %arg3[%c0_9, %c0_10], %13 {strides = array<i32>} : memref<1x512xf32, #tpu.memory_space<vmem>>, vector<1x512xf32>,
    return
  }
  func.func @transform_0(%arg0: i32) -> (i32, i32) {
    %c0_i32 = arith.constant 0 : i32
    %c0_i32_0 = arith.constant 0 : i32
    return %arg0, %c0_i32 : i32, i32
  }
  func.func @transform_1(%arg0: i32) -> (i32, i32) {
    %c0_i32 = arith.constant 0 : i32
    %c0_i32_0 = arith.constant 0 : i32
    %c0_i32_1 = arith.constant 0 : i32
    return %c0_i32, %c0_i32_0 : i32, i32
  }
  func.func @transform_2(%arg0: i32) -> (i32, i32) {
    %c0_i32 = arith.constant 0 : i32
    %c0_i32_0 = arith.constant 0 : i32
    %c0_i32_1 = arith.constant 0 : i32
    return %c0_i32, %c0_i32_0 : i32, i32
  }
}

</mosaic_0001>

<bundles_post_ra>
// kernel: tpu_custom_call.1
= control target key start
LH: loop header
LB: loop body
LE: loop exit
PB: predicated region body
PF: predicated region fallthrough
CT: control target
= control target key end

     0   :  { %8 = vsyncpa [#allocation3], 0  ;;  %s307_s0 = inlined_call_operand.hbm [shape: f32[8,512], index: 0, kind: input, shape index: {}]   ;;  %s308_s1 = inlined_call_operand.hbm [shape: f32[1,512], index: 1, kind: output, shape index: {0}]   ;;  %s309_s2 = inlined_call_operand.hbm [shape: f32[1,512], index: 2, kind: output, shape index: {1}]  }
   0x1   :  { %9 = vsyncpa [#allocation4], 0 }
   0x2   :  { %10 = vsyncpa [#allocation7], 0  ;;  %s258_s9 = smov [#allocation2]  }
   0x3   :  { %s17_s10 = sshll.u32 %s258_s9, 4  ;;  %s18_s10 = int_to_ptr.vmem [resolvable:$true] %s17_s10 }
   0x4   :  { %s200_s11 = scalar_lea.vmem %s18_s10, 512  ;;  %p205_p1 = scmp.lt.s32.totalorder %s18_s10, %s18_s10 }
   0x5   :  { %p201_p0 = scmp.ne.s32.totalorder %s18_s10, %s200_s11  ;;  %p206_p2 = scmp.lt.s32.totalorder %s200_s11, %s200_s11 }
   0x7   :  { %p207_p3 = por %p206_p2, %p205_p1 }
   0x9   :  { %p208_p4 = pnand %p207_p3, %p201_p0 }
   0xb   :  { %211 = shalt.err (!%p208_p4)
}
   0xc   :  { %20 = dma.hbm_to_vmem [thread:$0]  %s307_s0, 512, %s18_s10, [#allocation3]  }
   0xd   :  { %252 = dma.done.wait [#allocation3], 512  }
   0xe   :  { %253 = vsyncadd [#allocation3], 4294966784  ;;  %v28_v0 = vlaneseq  ;;  %v259_v1 = vmov 1966171168   ;;  %v260_v4 = vmov 0.0   ;;  %v34_v8 = vld [vmem:[#allocation2] sm:$0xff] }
   0xf   :  { %v70_v2 = vunpack.c.l.s4 %v259_v1  ;;  %v35_v9 = vld [vmem:[#allocation2 + $0x8] sm:$0xff]  ;;  %v36_v10 = vld [vmem:[#allocation2 + $0x10] sm:$0xff]  ;;  %v37_v11 = vld [vmem:[#allocation2 + $0x18] sm:$0xff]  ;;  %v39_v12 = vrot.slane %v34_v8, 4  ;;  %v99_v15 = vmul.f32 %v34_v8, %v34_v8  ;;  %s261_s0 = smov [#allocation5]   ;;  %s262_s15 = smov [#allocation6]  }
  0x10   :  { %vm281_vm0 = vcmp.lt.s32.totalorder %v28_v0, 512  ;;  %v73_v6 = vshrl.u32 %v28_v0, 7  ;;  %v45_v13 = vrot.slane %v35_v9, 4  ;;  %v51_v14 = vrot.slane %v36_v10, 4  ;;  %s164_s14 = sshll.u32 %s261_s0, 4  ;;  %s174_s16 = sshll.u32 %s262_s15, 4  ;;  %s165_s14 = int_to_ptr.vmem [resolvable:$true] %s164_s14  ;;  %s175_s16 = int_to_ptr.vmem [resolvable:$true] %s174_s16 }
  0x11   :  { %32 = vst.msk [vmem:[#allocation5] sm:$0xf] %vm281_vm0, %v260_v4  ;;  %v71_v5 = vunpack.c.0.s8 %v70_v2  ;;  %33 = vst.msk [vmem:[#allocation6] sm:$0xf] %vm281_vm0, %v260_v4  ;;  %v57_v16 = vrot.slane %v37_v11, 4  ;;  %v100_v17 = vmul.f32 %v35_v9, %v35_v9  ;;  %v101_v18 = vmul.f32 %v36_v10, %v36_v10  ;;  %s212_s17 = scalar_lea.vmem %s165_s14, 64  ;;  %p217_p6 = scmp.lt.s32.totalorder %s165_s14, %s165_s14 }
  0x12   :  { %v102_v19 = vmul.f32 %v37_v11, %v37_v11  ;;  %v40_v20 = vadd.f32 %v39_v12, %v34_v8  ;;  %v46_v21 = vadd.f32 %v45_v13, %v35_v9  ;;  %v52_v22 = vadd.f32 %v51_v14, %v36_v10  ;;  %p213_p5 = scmp.ne.s32.totalorder %s165_s14, %s212_s17  ;;  %p218_p7 = scmp.lt.s32.totalorder %s212_s17, %s212_s17 }
  0x13   :  { %v289_v7 = vsub.s32 %v71_v5, %v73_v6  ;;  %v103_v23 = vrot.slane %v99_v15, 4  ;;  %v58_v24 = vadd.f32 %v57_v16, %v37_v11  ;;  %v109_v25 = vrot.slane %v100_v17, 4 }
  0x14   :  { %v115_v26 = vrot.slane %v101_v18, 4  ;;  %v121_v27 = vrot.slane %v102_v19, 4  ;;  %v41_v28 = vrot.slane %v40_v20, 2  ;;  %v47_v29 = vrot.slane %v46_v21, 2  ;;  %p219_p8 = por %p218_p7, %p217_p6 }
  0x15   :  { %v53_v30 = vrot.slane %v52_v22, 2  ;;  %v104_v31 = vadd.f32 %v103_v23, %v99_v15  ;;  %v59_v32 = vrot.slane %v58_v24, 2  ;;  %v110_v33 = vadd.f32 %v109_v25, %v100_v17 }
  0x16   :  { %v116_v34 = vadd.f32 %v115_v26, %v101_v18  ;;  %v122_v35 = vadd.f32 %v121_v27, %v102_v19  ;;  %v42_v36 = vadd.f32 %v41_v28, %v40_v20  ;;  %v48_v37 = vadd.f32 %v47_v29, %v46_v21  ;;  %p220_p9 = pnand %p219_p8, %p213_p5 }
  0x17   :  { %v54_v38 = vadd.f32 %v53_v30, %v52_v22  ;;  %v105_v39 = vrot.slane %v104_v31, 2  ;;  %v60_v40 = vadd.f32 %v59_v32, %v58_v24  ;;  %v111_v41 = vrot.slane %v110_v33, 2 }
  0x18   :  { %v117_v42 = vrot.slane %v116_v34, 2  ;;  %v123_v43 = vrot.slane %v122_v35, 2  ;;  %v43_v44 = vrot.slane %v42_v36, 1  ;;  %v49_v45 = vrot.slane %v48_v37, 1  ;;  %v38_v11 = vld [vmem:[#allocation5] sm:$0xf] }
  0x19   :  { %v55_v46 = vrot.slane %v54_v38, 1  ;;  %v106_v47 = vadd.f32 %v105_v39, %v104_v31  ;;  %v61_v48 = vrot.slane %v60_v40, 1  ;;  %v112_v49 = vadd.f32 %v111_v41, %v110_v33  ;;  %v98_v14 = vld [vmem:[#allocation6] sm:$0xf] }
  0x1a   :  { %v118_v50 = vadd.f32 %v117_v42, %v116_v34  ;;  %v124_v51 = vadd.f32 %v123_v43, %v122_v35  ;;  %v44_v52 = vadd.f32 %v43_v44, %v42_v36  ;;  %v50_v53 = vadd.f32 %v49_v45, %v48_v37 }
  0x1b   :  { %v56_v54 = vadd.f32 %v55_v46, %v54_v38  ;;  %v107_v55 = vrot.slane %v106_v47, 1  ;;  %v62_v56 = vadd.f32 %v61_v48, %v60_v40  ;;  %v113_v57 = vrot.slane %v112_v49, 1 }
  0x1c   :  { %v119_v58 = vrot.slane %v118_v50, 1  ;;  %v125_v59 = vrot.slane %v124_v51, 1  ;;  %v67_v60 = vcombine.low %v44_v52, %v50_v53 }
  0x1d   :  { %v108_v61 = vadd.f32 %v107_v55, %v106_v47  ;;  %v68_v62 = vcombine.low %v56_v54, %v62_v56  ;;  %v114_v63 = vadd.f32 %v113_v57, %v112_v49 }
  0x1e   :  { %v120_v0 = vadd.f32 %v119_v58, %v118_v50  ;;  %v126_v1 = vadd.f32 %v125_v59, %v124_v51  ;;  %v75_v2 = vrot.slane %v67_v60, %v289_v7 }
  0x1f   :  { %v82_v4 = vrot.slane %v68_v62, %v289_v7  ;;  %v131_v5 = vcombine.low %v108_v61, %v114_v63 }
  0x20   :  { %v132_v6 = vcombine.low %v120_v0, %v126_v1 }
  0x21   :  { %v83_v8 = vcombine.low %v75_v2, %v82_v4  ;;  %v139_v9 = vrot.slane %v131_v5, %v289_v7 }
  0x22   :  { %v146_v10 = vrot.slane %v132_v6, %v289_v7 }
  0x23   :  { %v90_v12 = vrot.slane %v83_v8, %v289_v7 }
  0x24   :  { %v147_v13 = vcombine.low %v139_v9, %v146_v10 }
  0x25   :  { %v92_v15 = vadd.f32 %v90_v12, %v38_v11 }
  0x26   :  { %v154_v16 = vrot.slane %v147_v13, %v289_v7 }
  0x27   :  { %97 = vst.msk [vmem:[#allocation5] sm:$0xf] %vm281_vm0, %v92_v15 }
  0x28   :  { %v156_v17 = vadd.f32 %v154_v16, %v98_v14 }
  0x29   :  { %223 = shalt.err (!%p220_p9)
}
  0x2a   :  { %167 = dma.vmem_to_hbm [thread:$0]  %s165_s14, 64, %s308_s1, [#allocation4]   ;;  %157 = vst.msk [vmem:[#allocation6] sm:$0xf] %vm281_vm0, %v156_v17 }
  0x2b   :  { %s232_s20 = scalar_lea.vmem %s175_s16, 64  ;;  %p237_p11 = scmp.lt.s32.totalorder %s175_s16, %s175_s16 }
  0x2c   :  { %p233_p10 = scmp.ne.s32.totalorder %s175_s16, %s232_s20  ;;  %p238_p12 = scmp.lt.s32.totalorder %s232_s20, %s232_s20 }
  0x2e   :  { %p239_p13 = por %p238_p12, %p237_p11 }
  0x30   :  { %p240_p0 = pnand %p239_p13, %p233_p10 }
  0x32   :  { %243 = shalt.err (!%p240_p0)
}
  0x33   :  { %177 = dma.vmem_to_hbm [thread:$0]  %s175_s16, 64, %s309_s2, [#allocation7]  }
  0x34   :  { %254 = dma.done.wait [#allocation4], 64  }
  0x35   :  { %255 = vsyncadd [#allocation4], 4294967232 }
  0x36   :  { %256 = dma.done.wait [#allocation7], 64  }
  0x37   :  { %257 = vsyncadd [#allocation7], 4294967232 }
  0x38   :  { %184 = vsyncpa [#allocation3], 1 }
  0x39   :  { %185 = vsyncpa [#allocation4], 1 }
  0x3a   :  { %186 = vsyncpa [#allocation7], 1 }

</bundles_post_ra>
